<compile_context>
chip_gen: v7x
topology: tpu7x:2x2x1
jax: 0.10.0
libtpu: 0.0.40
codegen_flags: <defaults>
</compile_context>

<pallas_src>
import numpy as np
import jax
import jax.numpy as jnp
from jax.experimental import pallas as pl
from jax.experimental.pallas import tpu as pltpu

# ---- module hyper-parameters (SourceModuleHnNSF __init__) -------------------
SAMPLING_RATE = 16000
HARMONIC_NUM = 3                 # harmonic_num
SINE_AMP = 0.1                   # sine_amp
NOISE_STD = 0.003                # add_noise_std
VOICED_THRESHOLD = 0.0           # voiced_threshold
DIM = HARMONIC_NUM + 1           # number of sine channels fed to the Linear

LANES = 128                      # vreg lane width
MAX_ROW_TILE = 1024              # 1024*128*4 B = 512 KiB per f32 operand block

_TWO_PI = 2.0 * float(np.pi)


def _round_up(x, m):
    return ((x + m - 1) // m) * m


def _make_kernel(dim: int):
    def kernel(ws_ref, sphi_ref, cphi_ref, sc_ref,
               rad_ref, uv_ref, z_ref, out_ref):
        # ws_ref  : SMEM (dim,)  w[h] * sine_amp
        # sphi_ref: SMEM (dim,)  sin(2*pi*phi[h])
        # cphi_ref: SMEM (dim,)  cos(2*pi*phi[h])
        # sc_ref  : SMEM (3,)    [bias,
        #                         unvoiced_noise_amp*||w||,
        #                         (voiced - unvoiced)_noise_amp*||w||]
        # rad_ref / uv_ref / z_ref / out_ref : VMEM (row_tile, 128) f32
        theta = rad_ref[...] * _TWO_PI                   # base angle 2*pi*rad
        uv = uv_ref[...]
        s1 = jnp.sin(theta)                              # EUP
        c1 = jnp.cos(theta)                              # EUP
        # harmonic 1 (phi[0] == 0 in the reference, keep the general form)
        s, c = s1, c1
        acc = ws_ref[0] * (s * cphi_ref[0] + c * sphi_ref[0])
        for h in range(1, dim):                          # unrolled Chebyshev recurrence
            s, c = s * c1 + c * s1, c * c1 - s * s1      # sin/cos((h+1)*theta)
            acc = acc + ws_ref[h] * (s * cphi_ref[h] + c * sphi_ref[h])
        # noise_amp * ||w|| (uv-gated), multiplied once onto the collapsed normal
        noise_scale = sc_ref[1] + uv * sc_ref[2]
        pre = sc_ref[0] + uv * acc + noise_scale * z_ref[...]
        out_ref[...] = jnp.tanh(pre)                     # l_tanh (EUP)
    return kernel


def source_module_hn_nsf(f0, upp, w, bias, phi, noise_key):
    """f0: (B, L) f32; returns (sine_merge (B, L*upp, 1), None, None)."""
    f0 = f0.astype(jnp.float32)
    B, L = f0.shape
    T = L * upp
    fs = float(SAMPLING_RATE)

    # ---- SineGen._f02sine phase accumulation (glue, sequential over L) ------
    # TODO(synk): the frame-rate cumsum and nearest-neighbor uv upsample stay
    # in plain JAX glue (sequential / index-mapping work, not the hot path).
    a = jnp.arange(1, upp + 1, dtype=f0.dtype)                     # (upp,)
    rad = f0[:, :, None] / fs * a                                  # (B, L, upp)
    rad2 = jnp.fmod(rad[:, :-1, -1:] + 0.5, 1.0) - 0.5             # (B, L-1, 1)
    rad_acc = jnp.fmod(jnp.cumsum(rad2, axis=1), 1.0)              # (B, L-1, 1)
    rad_acc = jnp.pad(rad_acc, ((0, 0), (1, 0), (0, 0)))           # (B, L, 1)
    rad = (rad + rad_acc).reshape(B, T)                            # base phase (B, T)

    # ---- SineGen._f02uv + nearest-neighbor upsample (F.interpolate) ---------
    uv = (f0 > VOICED_THRESHOLD).astype(jnp.float32)               # (B, L)
    uv = jnp.repeat(uv, upp, axis=1)                               # (B, T)

    # ---- pad time to a lane multiple, reshape to full-sublane layout --------
    T_pad = _round_up(T, LANES)
    if T_pad != T:
        rad = jnp.pad(rad, ((0, 0), (0, T_pad - T)))
        uv = jnp.pad(uv, ((0, 0), (0, T_pad - T)))
    rows = B * (T_pad // LANES)
    rad = rad.reshape(rows, LANES)                                 # free row-major views
    uv = uv.reshape(rows, LANES)

    row_tile = min(MAX_ROW_TILE, _round_up(rows, 8))
    rows_pad = _round_up(rows, row_tile)
    if rows_pad != rows:
        rad = jnp.pad(rad, ((0, rows_pad - rows), (0, 0)))
        uv = jnp.pad(uv, ((0, rows_pad - rows), (0, 0)))

    # Single collapsed standard-normal plane, generated directly in the final
    # padded layout (no transpose, no extra pad pass).  See header comment.
    z = jax.random.normal(noise_key, (rows_pad, LANES), dtype=jnp.float32)

    # ---- host-side constant folding ------------------------------------------
    w = w.astype(jnp.float32)
    phi = phi.astype(jnp.float32)
    ws = w * SINE_AMP                                   # sine_amp folded into weights
    wnorm = jnp.sqrt(jnp.sum(w * w))                    # ||w||_2 for collapsed noise
    sphi = jnp.sin(_TWO_PI * phi)
    cphi = jnp.cos(_TWO_PI * phi)
    nu = (SINE_AMP / 3.0) * wnorm                       # unvoiced noise amp * ||w||
    nv = NOISE_STD * wnorm                              # voiced   noise amp * ||w||
    sc = jnp.stack([bias.astype(jnp.float32)[0], nu, nv - nu])     # (3,)

    out = pl.pallas_call(
        _make_kernel(DIM),
        out_shape=jax.ShapeDtypeStruct((rows_pad, LANES), jnp.float32),
        grid=(rows_pad // row_tile,),
        in_specs=[
            pl.BlockSpec(memory_space=pltpu.MemorySpace.SMEM),      # ws
            pl.BlockSpec(memory_space=pltpu.MemorySpace.SMEM),      # sphi
            pl.BlockSpec(memory_space=pltpu.MemorySpace.SMEM),      # cphi
            pl.BlockSpec(memory_space=pltpu.MemorySpace.SMEM),      # sc
            pl.BlockSpec((row_tile, LANES), lambda r: (r, 0)),      # rad
            pl.BlockSpec((row_tile, LANES), lambda r: (r, 0)),      # uv
            pl.BlockSpec((row_tile, LANES), lambda r: (r, 0)),      # z
        ],
        out_specs=pl.BlockSpec((row_tile, LANES), lambda r: (r, 0)),
        compiler_params=pltpu.CompilerParams(
            dimension_semantics=("parallel",)),
    )(ws, sphi, cphi, sc, rad, uv, z)

    # Drop row/lane padding (padded cells hold tanh(bias) -- keep this slice).
    sine_merge = out[:rows].reshape(B, T_pad)[:, :T].reshape(B, T, 1)
    return sine_merge, None, None


if __name__ == "__main__":
    key = jax.random.PRNGKey(0)
    k_f0, k_mask, k_w, k_b, k_phi, k_noise = jax.random.split(key, 6)

    B, L, upp = 2, 8, 16                         # T = L*upp = 128
    # Deterministic synthetic F0 track: voiced frames 80-400 Hz, some unvoiced.
    f0 = jax.random.uniform(k_f0, (B, L), minval=80.0, maxval=400.0)
    voiced = (jax.random.uniform(k_mask, (B, L)) > 0.3).astype(jnp.float32)
    f0 = f0 * voiced

    # torch.nn.Linear(DIM, 1) default init (uniform +/- 1/sqrt(DIM)), deterministic.
    bound = 1.0 / np.sqrt(DIM)
    w = jax.random.uniform(k_w, (DIM,), minval=-bound, maxval=bound,
                           dtype=jnp.float32)
    bias = jax.random.uniform(k_b, (1,), minval=-bound, maxval=bound,
                              dtype=jnp.float32)

    # SineGen rand_ini phases (phi[0] = 0), deterministic via JAX PRNG.
    phi = jax.random.uniform(k_phi, (DIM,), dtype=jnp.float32).at[0].set(0.0)

    sine_merge, _, _ = source_module_hn_nsf(f0, upp, w, bias, phi, k_noise)
    sine_merge = jax.block_until_ready(sine_merge)

    assert sine_merge.shape == (B, L * upp, 1), sine_merge.shape
    assert bool(jnp.all(jnp.isfinite(sine_merge)))
    print("KERNEL_OK")
</pallas_src>

<mosaic_0001>
module attributes {stable_mosaic.version = 11 : i64} {
  func.func @kernel(%arg0: i32, %arg1: memref<4xf32, #tpu.memory_space<smem>>, %arg2: memref<4xf32, #tpu.memory_space<smem>>, %arg3: memref<4xf32, #tpu.memory_space<smem>>, %arg4: memref<3xf32, #tpu.memory_space<smem>>, %arg5: memref<8x128xf32, #tpu.memory_space<vmem>>, %arg6: memref<8x128xf32, #tpu.memory_space<vmem>>, %arg7: memref<8x128xf32, #tpu.memory_space<vmem>>, %arg8: memref<8x128xf32, #tpu.memory_space<vmem>>) attributes {dimension_semantics = [#tpu.dimension_semantics<parallel>], iteration_bounds = array<i64: 1>, scalar_prefetch = 0 : i64, scratch_operands = 0 : i64, tpu.core_type = #tpu.core_type<tc>, window_params = [{transform_indices = @transform_0, window_bounds = array<i64: 4>}, {transform_indices = @transform_1, window_bounds = array<i64: 4>}, {transform_indices = @transform_2, window_bounds = array<i64: 4>}, {transform_indices = @transform_3, window_bounds = array<i64: 3>}, {transform_indices = @transform_4, window_bounds = array<i64: 8, 128>}, {transform_indices = @transform_5, window_bounds = array<i64: 8, 128>}, {transform_indices = @transform_6, window_bounds = array<i64: 8, 128>}, {transform_indices = @transform_7, window_bounds = array<i64: 8, 128>}]} {
    %c0 = arith.constant 0 : index
    %c0_0 = arith.constant 0 : index
    %0 = vector.load %arg5[%c0, %c0_0] : memref<8x128xf32, #tpu.memory_space<vmem>>, vector<8x128xf32>
    %cst = arith.constant 6.28318548 : f32
    %1 = vector.broadcast %cst : f32 to vector<8x128xf32>
    %2 = arith.mulf %0, %1 : vector<8x128xf32>
    %c0_1 = arith.constant 0 : index
    %c0_2 = arith.constant 0 : index
    %3 = vector.load %arg6[%c0_1, %c0_2] : memref<8x128xf32, #tpu.memory_space<vmem>>, vector<8x128xf32>
    %4 = math.sin %2 : vector<8x128xf32>
    %5 = math.cos %2 : vector<8x128xf32>
    %c0_3 = arith.constant 0 : index
    %6 = memref.load %arg1[%c0_3] : memref<4xf32, #tpu.memory_space<smem>>
    %c0_4 = arith.constant 0 : index
    %7 = memref.load %arg3[%c0_4] : memref<4xf32, #tpu.memory_space<smem>>
    %8 = vector.broadcast %7 : f32 to vector<8x128xf32>
    %9 = arith.mulf %4, %8 : vector<8x128xf32>
    %c0_5 = arith.constant 0 : index
    %10 = memref.load %arg2[%c0_5] : memref<4xf32, #tpu.memory_space<smem>>
    %11 = vector.broadcast %10 : f32 to vector<8x128xf32>
    %12 = arith.mulf %5, %11 : vector<8x128xf32>
    %13 = arith.addf %9, %12 : vector<8x128xf32>
    %14 = vector.broadcast %6 : f32 to vector<8x128xf32>
    %15 = arith.mulf %14, %13 : vector<8x128xf32>
    %16 = arith.mulf %4, %5 : vector<8x128xf32>
    %17 = arith.mulf %5, %4 : vector<8x128xf32>
    %18 = arith.addf %16, %17 : vector<8x128xf32>
    %19 = arith.mulf %5, %5 : vector<8x128xf32>
    %20 = arith.mulf %4, %4 : vector<8x128xf32>
    %21 = arith.subf %19, %20 : vector<8x128xf32>
    %c1 = arith.constant 1 : index
    %22 = memref.load %arg1[%c1] : memref<4xf32, #tpu.memory_space<smem>>
    %c1_6 = arith.constant 1 : index
    %23 = memref.load %arg3[%c1_6] : memref<4xf32, #tpu.memory_space<smem>>
    %24 = vector.broadcast %23 : f32 to vector<8x128xf32>
    %25 = arith.mulf %18, %24 : vector<8x128xf32>
    %c1_7 = arith.constant 1 : index
    %26 = memref.load %arg2[%c1_7] : memref<4xf32, #tpu.memory_space<smem>>
    %27 = vector.broadcast %26 : f32 to vector<8x128xf32>
    %28 = arith.mulf %21, %27 : vector<8x128xf32>
    %29 = arith.addf %25, %28 : vector<8x128xf32>
    %30 = vector.broadcast %22 : f32 to vector<8x128xf32>
    %31 = arith.mulf %30, %29 : vector<8x128xf32>
    %32 = arith.addf %15, %31 : vector<8x128xf32>
    %33 = arith.mulf %18, %5 : vector<8x128xf32>
    %34 = arith.mulf %21, %4 : vector<8x128xf32>
    %35 = arith.addf %33, %34 : vector<8x128xf32>
    %36 = arith.mulf %21, %5 : vector<8x128xf32>
    %37 = arith.mulf %18, %4 : vector<8x128xf32>
    %38 = arith.subf %36, %37 : vector<8x128xf32>
    %c2 = arith.constant 2 : index
    %39 = memref.load %arg1[%c2] : memref<4xf32, #tpu.memory_space<smem>>
    %c2_8 = arith.constant 2 : index
    %40 = memref.load %arg3[%c2_8] : memref<4xf32, #tpu.memory_space<smem>>
    %41 = vector.broadcast %40 : f32 to vector<8x128xf32>
    %42 = arith.mulf %35, %41 : vector<8x128xf32>
    %c2_9 = arith.constant 2 : index
    %43 = memref.load %arg2[%c2_9] : memref<4xf32, #tpu.memory_space<smem>>
    %44 = vector.broadcast %43 : f32 to vector<8x128xf32>
    %45 = arith.mulf %38, %44 : vector<8x128xf32>
    %46 = arith.addf %42, %45 : vector<8x128xf32>
    %47 = vector.broadcast %39 : f32 to vector<8x128xf32>
    %48 = arith.mulf %47, %46 : vector<8x128xf32>
    %49 = arith.addf %32, %48 : vector<8x128xf32>
    %50 = arith.mulf %35, %5 : vector<8x128xf32>
    %51 = arith.mulf %38, %4 : vector<8x128xf32>
    %52 = arith.addf %50, %51 : vector<8x128xf32>
    %53 = arith.mulf %38, %5 : vector<8x128xf32>
    %54 = arith.mulf %35, %4 : vector<8x128xf32>
    %55 = arith.subf %53, %54 : vector<8x128xf32>
    %c3 = arith.constant 3 : index
    %56 = memref.load %arg1[%c3] : memref<4xf32, #tpu.memory_space<smem>>
    %c3_10 = arith.constant 3 : index
    %57 = memref.load %arg3[%c3_10] : memref<4xf32, #tpu.memory_space<smem>>
    %58 = vector.broadcast %57 : f32 to vector<8x128xf32>
    %59 = arith.mulf %52, %58 : vector<8x128xf32>
    %c3_11 = arith.constant 3 : index
    %60 = memref.load %arg2[%c3_11] : memref<4xf32, #tpu.memory_space<smem>>
    %61 = vector.broadcast %60 : f32 to vector<8x128xf32>
    %62 = arith.mulf %55, %61 : vector<8x128xf32>
    %63 = arith.addf %59, %62 : vector<8x128xf32>
    %64 = vector.broadcast %56 : f32 to vector<8x128xf32>
    %65 = arith.mulf %64, %63 : vector<8x128xf32>
    %66 = arith.addf %49, %65 : vector<8x128xf32>
    %c1_12 = arith.constant 1 : index
    %67 = memref.load %arg4[%c1_12] : memref<3xf32, #tpu.memory_space<smem>>
    %c2_13 = arith.constant 2 : index
    %68 = memref.load %arg4[%c2_13] : memref<3xf32, #tpu.memory_space<smem>>
    %69 = vector.broadcast %68 : f32 to vector<8x128xf32>
    %70 = arith.mulf %3, %69 : vector<8x128xf32>
    %71 = vector.broadcast %67 : f32 to vector<8x128xf32>
    %72 = arith.addf %71, %70 : vector<8x128xf32>
    %c0_14 = arith.constant 0 : index
    %73 = memref.load %arg4[%c0_14] : memref<3xf32, #tpu.memory_space<smem>>
    %74 = arith.mulf %3, %66 : vector<8x128xf32>
    %75 = vector.broadcast %73 : f32 to vector<8x128xf32>
    %76 = arith.addf %75, %74 : vector<8x128xf32>
    %c0_15 = arith.constant 0 : index
    %c0_16 = arith.constant 0 : index
    %77 = vector.load %arg7[%c0_15, %c0_16] : memref<8x128xf32, #tpu.memory_space<vmem>>, vector<8x128xf32>
    %78 = arith.mulf %72, %77 : vector<8x128xf32>
    %79 = arith.addf %76, %78 : vector<8x128xf32>
    %80 = math.tanh %79 : vector<8x128xf32>
    %c0_17 = arith.constant 0 : index
    %c0_18 = arith.constant 0 : index
    %81 = vector.load %arg8[%c0_17, %c0_18] : memref<8x128xf32, #tpu.memory_space<vmem>>, vector<8x128xf32>
    tpu.vector_store %arg8[%c0_17, %c0_18], %80 {strides = array<i32>} : memref<8x128xf32, #tpu.memory_space<vmem>>, vector<8x128xf32>,
    return
  }
  func.func @transform_0(%arg0: i32) -> i32 {
    %c0_i32 = arith.constant 0 : i32
    %c0_i32_0 = arith.constant 0 : i32
    return %c0_i32 : i32
  }
  func.func @transform_1(%arg0: i32) -> i32 {
    %c0_i32 = arith.constant 0 : i32
    %c0_i32_0 = arith.constant 0 : i32
    return %c0_i32 : i32
  }
  func.func @transform_2(%arg0: i32) -> i32 {
    %c0_i32 = arith.constant 0 : i32
    %c0_i32_0 = arith.constant 0 : i32
    return %c0_i32 : i32
  }
  func.func @transform_3(%arg0: i32) -> i32 {
    %c0_i32 = arith.constant 0 : i32
    %c0_i32_0 = arith.constant 0 : i32
    return %c0_i32 : i32
  }
  func.func @transform_4(%arg0: i32) -> (i32, i32) {
    %c0_i32 = arith.constant 0 : i32
    %c0_i32_0 = arith.constant 0 : i32
    return %arg0, %c0_i32 : i32, i32
  }
  func.func @transform_5(%arg0: i32) -> (i32, i32) {
    %c0_i32 = arith.constant 0 : i32
    %c0_i32_0 = arith.constant 0 : i32
    return %arg0, %c0_i32 : i32, i32
  }
  func.func @transform_6(%arg0: i32) -> (i32, i32) {
    %c0_i32 = arith.constant 0 : i32
    %c0_i32_0 = arith.constant 0 : i32
    return %arg0, %c0_i32 : i32, i32
  }
  func.func @transform_7(%arg0: i32) -> (i32, i32) {
    %c0_i32 = arith.constant 0 : i32
    %c0_i32_0 = arith.constant 0 : i32
    return %arg0, %c0_i32 : i32, i32
  }
}

</mosaic_0001>

<bundles_post_ra>
// kernel: tpu_custom_call.1
= control target key start
LH: loop header
LB: loop body
LE: loop exit
PB: predicated region body
PF: predicated region fallthrough
CT: control target
= control target key end

     0   :  { %12 = vsyncpa [#allocation5], 0  ;;  %s692_s0 = inlined_call_operand.hbm [shape: f32[4], index: 0, kind: input, shape index: {}]   ;;  %s693_s1 = inlined_call_operand.vmem [shape: f32[4], index: 1, kind: input, shape index: {}]   ;;  %s694_s2 = inlined_call_operand.vmem [shape: f32[4], index: 2, kind: input, shape index: {}]   ;;  %s695_s3 = inlined_call_operand.hbm [shape: f32[3], index: 3, kind: input, shape index: {}]   ;;  %s696_s4 = inlined_call_operand.vmem [shape: f32[8,128], index: 4, kind: input, shape index: {}]   ;;  %s697_s5 = inlined_call_operand.vmem [shape: f32[8,128], index: 5, kind: input, shape index: {}]   ;;  %s698_s6 = inlined_call_operand.hbm [shape: f32[8,128], index: 6, kind: input, shape index: {}]   ;;  %s699_s7 = inlined_call_operand.hbm [shape: f32[8,128], index: 7, kind: output, shape index: {}]  }
   0x1   :  { %13 = vsyncpa [#allocation6], 0 }
   0x2   :  { %14 = vsyncpa [#allocation9], 0 }
   0x3   :  { %15 = vsyncpa [#allocation11], 0 }
   0x4   :  { %16 = vsyncpa [#allocation3], 0 }
   0x5   :  { %17 = vsyncpa [#allocation4], 0  ;;  %s32_s26 = sshll.u32 %s693_s1, 4  ;;  %s429_s29 = scalar_lea.hbm %s692_s0, 16  ;;  %s33_s26 = int_to_ptr.vmem [resolvable:$true] %s32_s26 }
   0x6   :  { %p430_p0 = scmp.ne.s32.totalorder %s692_s0, %s429_s29  ;;  %p433_p1 = scmp.lt.u32.totalorder %s429_s29, %s692_s0 }
   0x8   :  { %p435_p2 = pnand %p433_p1, %p430_p0 }
   0xa   :  { %438 = shalt.err (!%p435_p2)
}
   0xb   :  { %s529_s11 = smov [#allocation2]   ;;  %s439_s1 = scalar_lea.vmem %s33_s26, 16 }
   0xc   :  { %25 = dma.hbm_to_smem %s692_s0, 16, %s529_s11, [#allocation5]  }
   0xd   :  { %p440_p3 = scmp.ne.s32.totalorder %s33_s26, %s439_s1  ;;  %p444_p4 = scmp.lt.s32.totalorder %s33_s26, %s33_s26 }
   0xe   :  { %p445_p5 = scmp.lt.s32.totalorder %s439_s1, %s439_s1 }
  0x10   :  { %p446_p6 = por %p445_p5, %p444_p4 }
  0x12   :  { %p447_p7 = pnand %p446_p6, %p440_p3 }
  0x14   :  { %450 = shalt.err (!%p447_p7)
}
  0x15   :  { %s530_s14 = smov [#allocation7]   ;;  %s42_s17 = sshll.u32 %s694_s2, 4  ;;  %s43_s17 = int_to_ptr.vmem [resolvable:$true] %s42_s17 }
  0x16   :  { %35 = dma.vmem_to_smem %s33_s26, 16, %s530_s14, [#allocation6]  }
  0x17   :  { %s451_s18 = scalar_lea.vmem %s43_s17, 16  ;;  %p456_p9 = scmp.lt.s32.totalorder %s43_s17, %s43_s17 }
  0x18   :  { %p452_p8 = scmp.ne.s32.totalorder %s43_s17, %s451_s18  ;;  %p457_p10 = scmp.lt.s32.totalorder %s451_s18, %s451_s18 }
  0x1a   :  { %p458_p11 = por %p457_p10, %p456_p9 }
  0x1c   :  { %p459_p12 = pnand %p458_p11, %p452_p8 }
  0x1e   :  { %462 = shalt.err (!%p459_p12)
}
  0x1f   :  { %s531_s0 = smov [#allocation8]   ;;  %s463_s21 = scalar_lea.hbm %s695_s3, 16 }
  0x20   :  { %45 = dma.vmem_to_smem %s43_s17, 16, %s531_s0, [#allocation9]  }
  0x21   :  { %p464_p13 = scmp.ne.s32.totalorder %s695_s3, %s463_s21  ;;  %p467_p0 = scmp.lt.u32.totalorder %s463_s21, %s695_s3 }
  0x23   :  { %p469_p1 = pnand %p467_p0, %p464_p13 }
  0x25   :  { %472 = shalt.err (!%p469_p1)
}
  0x26   :  { %s532_s25 = smov [#allocation10]   ;;  %s533_s28 = smov [#allocation12]  }
  0x27   :  { %53 = dma.hbm_to_smem %s695_s3, 16, %s532_s25, [#allocation11]  }
  0x28   :  { %s64_s29 = sshll.u32 %s533_s28, 4  ;;  %s473_s9 = scalar_lea.hbm %s698_s6, 128  ;;  %s65_s29 = int_to_ptr.vmem [resolvable:$true] %s64_s29 }
  0x29   :  { %p474_p2 = scmp.ne.s32.totalorder %s698_s6, %s473_s9  ;;  %p477_p3 = scmp.lt.u32.totalorder %s473_s9, %s698_s6 }
  0x2b   :  { %p479_p4 = pnand %p477_p3, %p474_p2 }
  0x2d   :  { %482 = shalt.err (!%p479_p4)
}
  0x2e   :  { %s483_s1 = scalar_lea.vmem %s65_s29, 128  ;;  %p488_p6 = scmp.lt.s32.totalorder %s65_s29, %s65_s29 }
  0x2f   :  { %p484_p5 = scmp.ne.s32.totalorder %s65_s29, %s483_s1  ;;  %p489_p7 = scmp.lt.s32.totalorder %s483_s1, %s483_s1 }
  0x31   :  { %p490_p8 = por %p489_p7, %p488_p6 }
  0x33   :  { %p491_p9 = pnand %p490_p8, %p484_p5 }
  0x35   :  { %494 = shalt.err (!%p491_p9)
}
  0x36   :  { %67 = dma.hbm_to_vmem [thread:$0]  %s698_s6, 128, %s65_s29, [#allocation3]  }
  0x37   :  { %517 = dma.done.wait [#allocation5], 16  }
  0x38   :  { %518 = vsyncadd [#allocation5], 4294967280 }
  0x39   :  { %519 = dma.done.wait [#allocation6], 16  }
  0x3a   :  { %520 = vsyncadd [#allocation6], 4294967280 }
  0x3b   :  { %521 = dma.done.wait [#allocation9], 16  }
  0x3c   :  { %522 = vsyncadd [#allocation9], 4294967280 }
  0x3d   :  { %523 = dma.done.wait [#allocation11], 16  }
  0x3e   :  { %524 = vsyncadd [#allocation11], 4294967280 }
  0x3f   :  { %525 = dma.done.wait [#allocation3], 128  }
  0x40   :  { %526 = vsyncadd [#allocation3], 4294967168 }
  0x41   :  { %83 = sfence }
  0x42   :  { %v84_v0 = vld [vmem:[%s696_s4] sm:$0xff]  ;;  %v534_v13 = vmov 683565275   ;;  %v535_v15 = vmov 2475754826   ;;  %s295_s4 = sld [smem:[#allocation8]] }
  0x43   :  { %v626_v1 = vmul.f32 6.2831855, %v84_v0  ;;  %v536_v17 = vmov 2131351028   ;;  %v537_v19 = vmov 2102212464  }
  0x44   :  { %v538_v21 = vmov 920167782   ;;  %v539_v28 = vmov 1326507024   ;;  %s298_s6 = sld [smem:[#allocation7]]  ;;  %s646_s17 = sld [smem:[#allocation8 + $0x1]] }
  0x45   :  { %v90_v2 = vand.u32 2139095040, %v626_v1  ;;  %v87_v4 = vand.u32 2147483647, %v626_v1  ;;  %vm89_vm7 = vcmp.lt.s32.totalorder %v626_v1, 0  ;;  %s648_s18 = sld [smem:[#allocation7 + $0x1]]  ;;  %vm179_vm15 = vweird.f32 %v626_v1  ;;  %s651_s0 = sld [smem:[#allocation2]] }
  0x46   :  { %s653_s19 = sld [smem:[#allocation2 + $0x1]]  ;;  %s655_s20 = sld [smem:[#allocation8 + $0x2]] }
  0x47   :  { %v91_v3 = vshrl.u32 %v90_v2, 23  ;;  %v94_v7 = vand.u32 8388607, %v87_v4  ;;  %vm88_vm8 = vcmp.le.f32.partialorder %v87_v4, 0.7853982  ;;  %s657_s21 = sld [smem:[#allocation7 + $0x2]] }
  0x48   :  { %s661_s22 = sld [smem:[#allocation2 + $0x2]]  ;;  %s663_s23 = sld [smem:[#allocation8 + $0x3]] }
  0x49   :  { %v388_v5 = vadd.s32 4294967169, %v91_v3  ;;  %v95_v10 = vor.u32 8388608, %v94_v7  ;;  %s665_s24 = sld [smem:[#allocation7 + $0x3]]  ;;  %s667_s2 = sld [smem:[#allocation10 + $0x2]] }
  0x4a   :  { %s402_s25 = sld [smem:[#allocation2 + $0x3]]  ;;  %s405_s26 = sld [smem:[#allocation10 + $0x1]] }
  0x4b   :  { %v97_v6 = vadd.s32 1, %v388_v5  ;;  %v135_v30 = vshll.u32 %v95_v10, 8  ;;  %s360_s29 = sld [smem:[#allocation10]] }
  0x4d   :  { %vm98_vm0 = vcmp.gt.s32.totalorder %v97_v6, 0 }
  0x4e   :  { %v99_v8 = vsel %vm98_vm0, %v97_v6, 0 }
  0x4f   :  { %v101_v9 = vand.u32 31, %v99_v8  ;;  %v100_v11 = vshrl.u32 %v99_v8, 5 }
  0x51   :  { %v102_v12 = vsub.s32 32, %v101_v9  ;;  %v104_v14 = vshll.u32 %v534_v13, %v101_v9  ;;  %v107_v16 = vshll.u32 %v535_v15, %v101_v9  ;;  %v110_v18 = vshll.u32 %v536_v17, %v101_v9 }
  0x52   :  { %v113_v20 = vshll.u32 %v537_v19, %v101_v9  ;;  %v116_v22 = vshll.u32 %v538_v21, %v101_v9  ;;  %vm119_vm1 = vcmp.lt.s32.totalorder %v100_v11, 1  ;;  %vm122_vm2 = vcmp.lt.s32.totalorder %v100_v11, 4 }
  0x53   :  { %v103_v23 = vshrl.u32 %v534_v13, %v102_v12  ;;  %v105_v24 = vshrl.u32 %v535_v15, %v102_v12  ;;  %v108_v25 = vshrl.u32 %v536_v17, %v102_v12  ;;  %v111_v26 = vshrl.u32 %v537_v19, %v102_v12 }
  0x54   :  { %v114_v27 = vshrl.u32 %v538_v21, %v102_v12  ;;  %v117_v29 = vshrl.u32 %v539_v28, %v102_v12  ;;  %vm120_vm3 = vcmp.lt.s32.totalorder %v100_v11, 2  ;;  %vm121_vm4 = vcmp.lt.s32.totalorder %v100_v11, 3 }
  0x55   :  { %v106_v31 = vor.u32 %v105_v24, %v104_v14  ;;  %v109_v32 = vor.u32 %v108_v25, %v107_v16  ;;  %v112_v33 = vor.u32 %v111_v26, %v110_v18 }
  0x56   :  { %v115_v34 = vor.u32 %v114_v27, %v113_v20  ;;  %v118_v35 = vor.u32 %v117_v29, %v116_v22 }
  0x57   :  { %v123_v36 = vsel %vm119_vm1, %v103_v23, %v106_v31  ;;  %v124_v37 = vsel %vm122_vm2, %v112_v33, 2102212464  ;;  %v127_v38 = vsel %vm119_vm1, %v106_v31, %v109_v32  ;;  %v131_v39 = vsel %vm119_vm1, %v109_v32, %v112_v33 }
  0x58   :  { %v125_v40 = vsel %vm121_vm4, %v109_v32, %v124_v37  ;;  %v128_v41 = vsel %vm122_vm2, %v115_v34, 920167782  ;;  %v132_v42 = vsel %vm122_vm2, %v118_v35, 1326507024  ;;  %v296_v31 = vstv %s295_s4 }
  0x59   :  { %v129_v43 = vsel %vm121_vm4, %v112_v33, %v128_v41  ;;  %v133_v44 = vsel %vm121_vm4, %v115_v34, %v132_v42  ;;  %v126_v45 = vsel %vm120_vm3, %v123_v36, %v125_v40  ;;  %v299_v32 = vstv %s298_s6 }
  0x5a   :  { %v130_v46 = vsel %vm120_vm3, %v127_v38, %v129_v43  ;;  %v134_v47 = vsel %vm120_vm3, %v131_v39, %v133_v44  ;;  %v142_v52 = vmul.u32 %v135_v30, %v126_v45  ;;  %v311_v41 = vstv %s646_s17 }
  0x5b   :  { %v632_v48 = vmul.u32.u64.low %v135_v30, %v134_v47  ;;  %v633_v49 = vmul.u32.u64.high %v135_v30, %v134_v47, %v632_v48  ;;  %v635_v50 = vmul.u32.u64.low %v135_v30, %v130_v46  ;;  %v636_v51 = vmul.u32.u64.high %v135_v30, %v130_v46, %v635_v50 }
  0x5c   :  { %v314_v43 = vstv %s648_s18 }
  0x5d   :  { %vm144_vm5 = vc.u32 %v633_v49, %v635_v50  ;;  %v145_v53 = vadd.s32 1, %v636_v51  ;;  %v143_v0 = vadd.s32 %v635_v50, %v633_v49  ;;  %v302_v49 = vstv %s651_s0 }
  0x5f   :  { %v146_v54 = vsel %vm144_vm5, %v145_v53, %v636_v51  ;;  %v317_v53 = vstv %s653_s19 }
  0x60   :  { %v147_v55 = vadd.s32 %v146_v54, %v142_v52  ;;  %v328_v54 = vstv %s655_s20 }
  0x62   :  { %v148_v56 = vadd.s32 536870912, %v147_v55 }
  0x64   :  { %v149_v57 = vshrl.u32 %v148_v56, 30 }
  0x66   :  { %v150_v58 = vshll.u32 %v149_v57, 30  ;;  %v173_v14 = vsub.s32 4, %v149_v57 }
  0x68   :  { %v151_v59 = vsub.s32 %v147_v55, %v150_v58  ;;  %v174_v17 = vsel %vm89_vm7, %v173_v14, %v149_v57  ;;  %v331_v55 = vstv %s657_s21 }
  0x69   :  { %v176_v20 = vsel %vm88_vm8, 0, %v174_v17 }
  0x6a   :  { %v153_v60 = vsub.s32 0, %v151_v59  ;;  %v180_v21 = vadd.s32 3, %v176_v20  ;;  %v284_v23 = vand.u32 3, %v176_v20 }
  0x6c   :  { %v389_v61 = vmin.u32 %v153_v60, %v151_v59  ;;  %v181_v22 = vand.u32 3, %v180_v21  ;;  %vm289_vm10 = vcmp.eq.s32.totalorder %v284_v23, 2  ;;  %vm286_vm12 = vcmp.eq.s32.totalorder %v284_v23, 0 }
  0x6d   :  { %vm285_vm14 = vcmp.lt.s32.totalorder %v284_v23, 2 }
  0x6e   :  { %v155_v62 = vclz %v389_v61  ;;  %vm186_vm9 = vcmp.eq.s32.totalorder %v181_v22, 2  ;;  %vm183_vm11 = vcmp.eq.s32.totalorder %v181_v22, 0  ;;  %vm182_vm13 = vcmp.lt.s32.totalorder %v181_v22, 2 }
  0x70   :  { %v390_v63 = vadd.s32 4294967294, %v155_v62 }
  0x72   :  { %vm391_vm6 = vcmp.lt.s32.totalorder %v390_v63, 0 }
  0x73   :  { %v158_v2 = vsel %vm391_vm6, 0, %v390_v63 }
  0x74   :  { %v159_v3 = vsub.s32 32, %v158_v2  ;;  %v160_v5 = vshll.u32 %v151_v59, %v158_v2  ;;  %v163_v6 = vsub.s32 4294967266, %v158_v2 }
  0x76   :  { %v161_v7 = vshrl.u32 %v143_v0, %v159_v3  ;;  %v164_v8 = vadd.s32 127, %v163_v6  ;;  %v334_v0 = vstv %s661_s22  ;;  %v86_v6 = vld [vmem:[%s697_s5] sm:$0xff]  ;;  %s540_s5 = smov [#allocation13]  }
  0x77   :  { %s375_s30 = sshll.u32 %s540_s5, 4  ;;  %s376_s30 = int_to_ptr.vmem [resolvable:$true] %s375_s30 }
  0x78   :  { %v162_v9 = vor.u32 %v161_v7, %v160_v5  ;;  %v165_v10 = vshll.u32 %v164_v8, 23  ;;  %v345_v8 = vstv %s663_s23  ;;  %s495_s8 = scalar_lea.vmem %s376_s30, 128  ;;  %p500_p11 = scmp.lt.s32.totalorder %s376_s30, %s376_s30 }
  0x79   :  { %p496_p10 = scmp.ne.s32.totalorder %s376_s30, %s495_s8  ;;  %p501_p12 = scmp.lt.s32.totalorder %s495_s8, %s495_s8 }
  0x7a   :  { %v166_v11 = vor.u32 4788187, %v165_v10  ;;  %v169_v12 = vcvt.s32.f32 %v162_v9  ;;  %v348_v9 = vstv %s665_s24  ;;  %v356_v10 = vstv %s667_s2 }
  0x7b   :  { %v357_v17 = vmul.f32 %v356_v10, %v86_v6  ;;  %p502_p13 = por %p501_p12, %p500_p11 }
  0x7c   :  { %v167_v13 = vand.u32 2147483647, %v166_v11 }
  0x7d   :  { %p503_p0 = pnand %p502_p13, %p496_p10 }
  0x7e   :  { %v170_v15 = vmul.f32 %v169_v12, %v167_v13 }
  0x80   :  { %v171_v16 = vxor.u32 2147483648, %v170_v15 }
  0x82   :  { %v172_v18 = vsel %vm89_vm7, %v171_v16, %v170_v15 }
  0x83   :  { %v175_v19 = vsel %vm88_vm8, %v626_v1, %v172_v18  ;;  %v351_v18 = vstv %s402_s25 }
  0x84   :  { %423 = vcosq.f32 %v175_v19 }
  0x85   :  { %425 = vsinq.f32 %v175_v19  ;;  %v358_v19 = vstv %s405_s26 }
  0x86   :  { %v359_v23 = vadd.f32 %v358_v19, %v357_v17 }
  0x8e   :  { %v424_v24 = vpop.eup %423 }
  0x8f   :  { %v426_v25 = vpop.eup %425  ;;  %v187_v4 = vxor.u32 2147483648, %v424_v24 }
  0x90   :  { %v184_v26 = vxor.u32 2147483648, %v426_v25 }
  0x91   :  { %v188_v27 = vsel %vm186_vm9, %v187_v4, %v426_v25  ;;  %v291_v28 = vsel %vm289_vm10, %v187_v4, %v426_v25  ;;  %v362_v4 = vstv %s360_s29 }
  0x92   :  { %v185_v29 = vsel %vm183_vm11, %v424_v24, %v184_v26  ;;  %v288_v30 = vsel %vm286_vm12, %v424_v24, %v184_v26  ;;  %v364_v24 = vld [vmem:[#allocation12] sm:$0xff] }
  0x93   :  { %v189_v33 = vsel %vm182_vm13, %v185_v29, %v188_v27  ;;  %v292_v34 = vsel %vm285_vm14, %v288_v30, %v291_v28  ;;  %v365_v27 = vmul.f32 %v364_v24, %v359_v23 }
  0x94   :  { %v190_v35 = vsel %vm179_vm15, nan, %v189_v33  ;;  %v293_v1 = vsel %vm179_vm15, nan, %v292_v34 }
  0x95   :  { %v297_v36 = vmul.f32 %v296_v31, %v190_v35  ;;  %v300_v37 = vmul.f32 %v299_v32, %v293_v1  ;;  %v304_v38 = vmul.f32 %v293_v1, %v190_v35  ;;  %v306_v39 = vmul.f32 %v293_v1, %v293_v1 }
  0x96   :  { %v307_v40 = vmul.f32 %v190_v35, %v190_v35 }
  0x97   :  { %v305_v42 = vadd.f32 %v304_v38, %v304_v38  ;;  %v301_v45 = vadd.f32 %v300_v37, %v297_v36 }
  0x98   :  { %v308_v44 = vsub.f32 %v306_v39, %v307_v40 }
  0x99   :  { %v312_v46 = vmul.f32 %v311_v41, %v305_v42  ;;  %v320_v47 = vmul.f32 %v305_v42, %v293_v1  ;;  %v324_v48 = vmul.f32 %v305_v42, %v190_v35  ;;  %v303_v59 = vmul.f32 %v302_v49, %v301_v45 }
  0x9a   :  { %v315_v50 = vmul.f32 %v314_v43, %v308_v44  ;;  %v321_v51 = vmul.f32 %v308_v44, %v190_v35  ;;  %v323_v52 = vmul.f32 %v308_v44, %v293_v1 }
  0x9c   :  { %v316_v56 = vadd.f32 %v315_v50, %v312_v46  ;;  %v322_v57 = vadd.f32 %v321_v51, %v320_v47  ;;  %v325_v58 = vsub.f32 %v323_v52, %v324_v48 }
  0x9e   :  { %v318_v60 = vmul.f32 %v317_v53, %v316_v56  ;;  %v329_v61 = vmul.f32 %v328_v54, %v322_v57  ;;  %v332_v62 = vmul.f32 %v331_v55, %v325_v58  ;;  %v337_v63 = vmul.f32 %v322_v57, %v293_v1 }
  0x9f   :  { %v338_v2 = vmul.f32 %v325_v58, %v190_v35  ;;  %v340_v3 = vmul.f32 %v325_v58, %v293_v1  ;;  %v341_v5 = vmul.f32 %v322_v57, %v190_v35 }
  0xa0   :  { %v333_v7 = vadd.f32 %v332_v62, %v329_v61  ;;  %v319_v11 = vadd.f32 %v318_v60, %v303_v59 }
  0xa1   :  { %v339_v12 = vadd.f32 %v338_v2, %v337_v63  ;;  %v342_v13 = vsub.f32 %v340_v3, %v341_v5 }
  0xa2   :  { %v335_v14 = vmul.f32 %v334_v0, %v333_v7 }
  0xa3   :  { %v346_v15 = vmul.f32 %v345_v8, %v339_v12  ;;  %v349_v16 = vmul.f32 %v348_v9, %v342_v13 }
  0xa4   :  { %v336_v20 = vadd.f32 %v335_v14, %v319_v11 }
  0xa5   :  { %v350_v21 = vadd.f32 %v349_v16, %v346_v15 }
  0xa7   :  { %v352_v22 = vmul.f32 %v351_v18, %v350_v21 }
  0xa9   :  { %v353_v25 = vadd.f32 %v352_v22, %v336_v20 }
  0xab   :  { %v361_v26 = vmul.f32 %v353_v25, %v86_v6 }
  0xad   :  { %v363_v28 = vadd.f32 %v362_v4, %v361_v26 }
  0xaf   :  { %v366_v29 = vadd.f32 %v365_v27, %v363_v28 }
  0xb1   :  { %427 = vtanh.f32 %v366_v29 }
  0xbb   :  { %v428_v30 = vpop.eup %427 }
  0xbc   :  { %368 = vst [vmem:[#allocation13] sm:$0xff] %v428_v30 }
  0xbd   :  { %506 = shalt.err (!%p503_p0)
}
  0xbe   :  { %s507_s11 = scalar_lea.hbm %s699_s7, 128 }
  0xbf   :  { %p508_p1 = scmp.ne.s32.totalorder %s699_s7, %s507_s11  ;;  %p511_p2 = scmp.lt.u32.totalorder %s507_s11, %s699_s7 }
  0xc1   :  { %p513_p3 = pnand %p511_p2, %p508_p1 }
  0xc3   :  { %516 = shalt.err (!%p513_p3)
}
  0xc4   :  { %378 = dma.vmem_to_hbm [thread:$0]  %s376_s30, 128, %s699_s7, [#allocation4]  }
  0xc5   :  { %527 = dma.done.wait [#allocation4], 128  }
  0xc6   :  { %528 = vsyncadd [#allocation4], 4294967168 }
  0xc7   :  { %382 = vsyncpa [#allocation3], 1 }
  0xc8   :  { %383 = vsyncpa [#allocation4], 1 }
  0xc9   :  { %384 = vsyncpa [#allocation5], 1 }
  0xca   :  { %385 = vsyncpa [#allocation11], 1 }
  0xcb   :  { %386 = vsyncpa [#allocation6], 1 }
  0xcc   :  { %387 = vsyncpa [#allocation9], 1 }

</bundles_post_ra>
